<compile_context>
chip_gen: v6e
topology: v6e:2x2x1
jax: 0.10.0
libtpu: 0.0.40
codegen_flags: <defaults>
</compile_context>

<pallas_src>
import functools
import math

import jax
import jax.numpy as jnp
from jax.experimental import pallas as pl
from jax.experimental.pallas import tpu as pltpu


# Scoped-VMEM limit: safe on v5e/v6e (128 MiB physical) and v7x (64 MiB).
_VMEM_LIMIT_BYTES = 48 * 1024 * 1024
# Budget for the RMSNorm row tile (input + output tiles, each double-buffered).
_RMSNORM_TILE_BUDGET_BYTES = 20 * 1024 * 1024


def _round_up(x: int, m: int) -> int:
    return ((x + m - 1) // m) * m


def _sublane_multiple(dtype) -> int:
    # Rows per packed vreg sublane group: 8 for 4-byte, 16 for bf16, 32 for int8/fp8.
    return max(8, 32 // jnp.dtype(dtype).itemsize)


# --------------------------------------------------------------------------- #
# RMSNorm
# --------------------------------------------------------------------------- #
def _rmsnorm_kernel(x_ref, w_ref, o_ref, *, eps: float):
    x = x_ref[...].astype(jnp.float32)                       # x.float()
    inv = jax.lax.rsqrt(jnp.mean(x * x, axis=-1, keepdims=True) + eps)
    # Keep the torch `.type_as(x)` rounding step (no-op for f32 inputs).
    normed = (x * inv).astype(x_ref.dtype)
    # weight is already f32 from the wrapper -> single cast to the output dtype.
    o_ref[...] = (w_ref[...] * normed.astype(jnp.float32)).astype(o_ref.dtype)


def rmsnorm(x: jax.Array, weight: jax.Array, eps: float) -> jax.Array:
    """RMSNorm over the last dim. Output dtype follows torch: f32-weight * x."""
    orig_shape = x.shape
    dim = orig_shape[-1]
    rows = math.prod(orig_shape[:-1])
    out_dtype = jnp.promote_types(jnp.float32, x.dtype)

    x2d = x.reshape(rows, dim)
    w2d = weight.reshape(1, dim).astype(jnp.float32)

    # --- generation-aware tile sizing (HBM-bandwidth-bound kernel) ---
    sub = _sublane_multiple(x.dtype)
    bytes_per_row = dim * (jnp.dtype(x.dtype).itemsize + jnp.dtype(out_dtype).itemsize) * 2
    tm_budget = _RMSNORM_TILE_BUDGET_BYTES // max(bytes_per_row, 1)
    # Keep >=4 grid steps for large inputs so v7x's 2 TensorCores both get work.
    tm = min(tm_budget, 1024, _round_up(pl.cdiv(rows, 4), sub), _round_up(rows, sub))
    tm = max(sub, (tm // sub) * sub)

    rows_p = _round_up(rows, tm)
    if rows_p != rows:
        x2d = jnp.pad(x2d, ((0, rows_p - rows), (0, 0)))      # padded rows are discarded

    out = pl.pallas_call(
        functools.partial(_rmsnorm_kernel, eps=eps),
        out_shape=jax.ShapeDtypeStruct((rows_p, dim), out_dtype),
        grid_spec=pltpu.PrefetchScalarGridSpec(
            num_scalar_prefetch=0,
            grid=(rows_p // tm,),
            in_specs=[
                pl.BlockSpec((tm, dim), lambda i: (i, 0)),
                pl.BlockSpec((1, dim), lambda i: (0, 0)),
            ],
            out_specs=pl.BlockSpec((tm, dim), lambda i: (i, 0)),
        ),
        compiler_params=pltpu.CompilerParams(
            dimension_semantics=("parallel",),
            vmem_limit_bytes=_VMEM_LIMIT_BYTES,
        ),
    )(x2d, w2d)

    if rows_p != rows:
        out = out[:rows]
    return out.reshape(orig_shape[:-1] + (dim,))


# --------------------------------------------------------------------------- #
# Tiled matmul (all linear projections)
# --------------------------------------------------------------------------- #
def _matmul_kernel(x_ref, w_ref, o_ref, acc_ref):
    @pl.when(pl.program_id(2) == 0)
    def _():
        acc_ref[...] = jnp.zeros_like(acc_ref)

    acc_ref[...] += jnp.dot(x_ref[...], w_ref[...], preferred_element_type=jnp.float32)
    o_ref[...] = acc_ref[...].astype(o_ref.dtype)


def linear(x2d: jax.Array, w: jax.Array) -> jax.Array:
    """x2d: (M, K), w: (K, N) -> (M, N)."""
    M, K = x2d.shape
    K2, N = w.shape
    assert K == K2, (K, K2)
    out_dtype = jnp.promote_types(x2d.dtype, w.dtype)

    tm = min(256, _round_up(M, 8))
    Mp = _round_up(M, tm)
    if Mp != M:
        x2d = jnp.pad(x2d, ((0, Mp - M), (0, 0)))
    tk = K if K <= 512 else (512 if K % 512 == 0 else K)
    tn = N if N <= 256 else (256 if N % 256 == 0 else N)

    out = pl.pallas_call(
        _matmul_kernel,
        out_shape=jax.ShapeDtypeStruct((Mp, N), out_dtype),
        grid_spec=pltpu.PrefetchScalarGridSpec(
            num_scalar_prefetch=0,
            grid=(Mp // tm, N // tn, K // tk),
            in_specs=[
                pl.BlockSpec((tm, tk), lambda i, j, k: (i, k)),
                pl.BlockSpec((tk, tn), lambda i, j, k: (k, j)),
            ],
            out_specs=pl.BlockSpec((tm, tn), lambda i, j, k: (i, j)),
            scratch_shapes=[pltpu.VMEM((tm, tn), jnp.float32)],
        ),
        compiler_params=pltpu.CompilerParams(
            dimension_semantics=("parallel", "parallel", "arbitrary"),
            vmem_limit_bytes=_VMEM_LIMIT_BYTES,
        ),
    )(x2d, w)

    if Mp != M:
        out = out[:M]
    return out


# --------------------------------------------------------------------------- #
# Causal attention (GQA handled via BlockSpec index_map)
# --------------------------------------------------------------------------- #
def _attn_kernel(q_ref, k_ref, v_ref, o_ref, *, scale: float):
    q = q_ref[...].astype(jnp.float32)          # (Lq, hd)
    k = k_ref[...].astype(jnp.float32)          # (Lk, hd)
    v = v_ref[...].astype(jnp.float32)          # (Lk, hd)
    s = jax.lax.dot_general(q, k, (((1,), (1,)), ((), ())),
                            preferred_element_type=jnp.float32) * scale
    lq, lk = s.shape
    row = jax.lax.broadcasted_iota(jnp.int32, (lq, lk), 0)
    col = jax.lax.broadcasted_iota(jnp.int32, (lq, lk), 1)
    s = jnp.where(col <= row, s, -jnp.inf)      # causal (torch is_causal)
    m = jnp.max(s, axis=-1, keepdims=True)
    p = jnp.exp(s - m)
    o = jnp.dot(p, v, preferred_element_type=jnp.float32)
    o_ref[...] = (o / jnp.sum(p, axis=-1, keepdims=True)).astype(o_ref.dtype)


def _sdpa_causal(q, k, v, n_rep: int):
    """q: (bs, H, Lq, hd); k, v: (bs, KVH, Lk, hd)."""
    bs, H, Lq, hd = q.shape
    _, _, Lk, _ = k.shape
    scale = 1.0 / math.sqrt(hd)
    # TODO(synk): for long sequences, tile the KV axis (flash-attention style)
    # instead of holding the full (Lq, Lk) score matrix per head.
    kv_spec = pl.BlockSpec((None, None, Lk, hd), lambda b, h: (b, h // n_rep, 0, 0))
    return pl.pallas_call(
        functools.partial(_attn_kernel, scale=scale),
        out_shape=jax.ShapeDtypeStruct((bs, H, Lq, hd), q.dtype),
        grid_spec=pltpu.PrefetchScalarGridSpec(
            num_scalar_prefetch=0,
            grid=(bs, H),
            in_specs=[
                pl.BlockSpec((None, None, Lq, hd), lambda b, h: (b, h, 0, 0)),
                kv_spec,
                kv_spec,
            ],
            out_specs=pl.BlockSpec((None, None, Lq, hd), lambda b, h: (b, h, 0, 0)),
        ),
        compiler_params=pltpu.CompilerParams(
            dimension_semantics=("parallel", "parallel"),
            vmem_limit_bytes=_VMEM_LIMIT_BYTES,
        ),
    )(q, k, v)


# --------------------------------------------------------------------------- #
# Fused FeedForward: w2( silu( w1(x) * w3(x) ) )   (silu applied to the product,
# exactly as in the torch spec)
# --------------------------------------------------------------------------- #
def _ffn_kernel(x_ref, w1_ref, w3_ref, w2_ref, o_ref):
    x = x_ref[...]
    a = jnp.dot(x, w1_ref[...], preferred_element_type=jnp.float32)
    b = jnp.dot(x, w3_ref[...], preferred_element_type=jnp.float32)
    g = a * b
    h = g * jax.nn.sigmoid(g)                   # F.silu(w1(x) * w3(x))
    o_ref[...] = jnp.dot(h.astype(w2_ref.dtype), w2_ref[...],
                         preferred_element_type=jnp.float32).astype(o_ref.dtype)


def feed_forward(x, w1, w2, w3):
    # TODO(synk): tile the hidden dim for configs whose FFN weights exceed VMEM.
    orig_shape = x.shape
    D = orig_shape[-1]
    M = math.prod(orig_shape[:-1])
    H = w1.shape[1]
    out_dtype = jnp.promote_types(x.dtype, w1.dtype)

    x2d = x.reshape(M, D)
    tm = min(256, _round_up(M, 8))
    Mp = _round_up(M, tm)
    if Mp != M:
        x2d = jnp.pad(x2d, ((0, Mp - M), (0, 0)))

    out = pl.pallas_call(
        _ffn_kernel,
        out_shape=jax.ShapeDtypeStruct((Mp, D), out_dtype),
        grid_spec=pltpu.PrefetchScalarGridSpec(
            num_scalar_prefetch=0,
            grid=(Mp // tm,),
            in_specs=[
                pl.BlockSpec((tm, D), lambda i: (i, 0)),
                pl.BlockSpec((D, H), lambda i: (0, 0)),
                pl.BlockSpec((D, H), lambda i: (0, 0)),
                pl.BlockSpec((H, D), lambda i: (0, 0)),
            ],
            out_specs=pl.BlockSpec((tm, D), lambda i: (i, 0)),
        ),
        compiler_params=pltpu.CompilerParams(
            dimension_semantics=("parallel",),
            vmem_limit_bytes=_VMEM_LIMIT_BYTES,
        ),
    )(x2d, w1, w3, w2)

    if Mp != M:
        out = out[:M]
    return out.reshape(orig_shape[:-1] + (D,))


# --------------------------------------------------------------------------- #
# RoPE (elementwise glue, plain JAX)
# --------------------------------------------------------------------------- #
def precompute_pos_cis(seq_len: int, head_dim: int, theta: float):
    freqs = 1.0 / (theta ** (jnp.arange(0, head_dim, 2, dtype=jnp.float32) / head_dim))
    t = jnp.arange(seq_len, dtype=jnp.float32)
    ang = jnp.outer(t, freqs)                     # (seq, head_dim // 2)
    return jnp.cos(ang), jnp.sin(ang)             # real/imag of the complex pos_cis


def _rotate(x, cos, sin):
    xf = x.astype(jnp.float32)
    xr = xf.reshape(*xf.shape[:-1], -1, 2)        # (..., hd//2, 2) == view_as_complex
    x_re, x_im = xr[..., 0], xr[..., 1]
    c = cos[None, :, None, :]
    s = sin[None, :, None, :]
    o_re = x_re * c - x_im * s
    o_im = x_re * s + x_im * c
    return jnp.stack([o_re, o_im], axis=-1).reshape(x.shape).astype(x.dtype)


def apply_rotary_emb(xq, xk, cos, sin):
    return _rotate(xq, cos, sin), _rotate(xk, cos, sin)


# --------------------------------------------------------------------------- #
# Attention + TransformerBlock wrappers
# --------------------------------------------------------------------------- #
def attention_forward(x, cos, sin, wq, wk, wv, wo, *, n_heads, n_kv_heads,
                      past_key_value=None, use_cache=False):
    bs, S, D = x.shape
    hd = D // n_heads
    n_rep = n_heads // n_kv_heads

    x2d = x.reshape(bs * S, D)
    xq = linear(x2d, wq).reshape(bs, S, n_heads, hd)
    xk = linear(x2d, wk).reshape(bs, S, n_kv_heads, hd)
    xv = linear(x2d, wv).reshape(bs, S, n_kv_heads, hd)

    # Spec quirk kept verbatim: rotated keys overwrite xv; xk stays un-rotated.
    xq, xv = apply_rotary_emb(xq, xk, cos, sin)

    if past_key_value is not None:
        xk = jnp.concatenate([past_key_value[0], xk], axis=1)
        xv = jnp.concatenate([past_key_value[1], xv], axis=1)
    past_kv = (xk, xv) if use_cache else None

    q = jnp.transpose(xq, (0, 2, 1, 3))           # (bs, H, S, hd)
    k = jnp.transpose(xk, (0, 2, 1, 3))           # (bs, KVH, Skv, hd)
    v = jnp.transpose(xv, (0, 2, 1, 3))
    o = _sdpa_causal(q, k, v, n_rep)              # (bs, H, S, hd)
    o = jnp.transpose(o, (0, 2, 1, 3)).reshape(bs * S, n_heads * hd)
    out = linear(o, wo).reshape(bs, S, D)
    return out, past_kv


def transformer_block(x, cos, sin, params, *, n_heads, n_kv_heads, eps,
                      past_key_value=None, use_cache=False):
    h_attn, past_kv = attention_forward(
        rmsnorm(x, params["attn_norm"], eps), cos, sin,
        params["wq"], params["wk"], params["wv"], params["wo"],
        n_heads=n_heads, n_kv_heads=n_kv_heads,
        past_key_value=past_key_value, use_cache=use_cache)
    h = x + h_attn
    out = h + feed_forward(rmsnorm(h, params["ffn_norm"], eps),
                           params["w1"], params["w2"], params["w3"])
    return out, past_kv


# --------------------------------------------------------------------------- #
# Pure-JAX reference (mirrors the torch code, including the RoPE/xv quirk)
# --------------------------------------------------------------------------- #
def _rmsnorm_ref(x, w, eps):
    xf = x.astype(jnp.float32)
    inv = jax.lax.rsqrt(jnp.mean(xf * xf, axis=-1, keepdims=True) + eps)
    return w.astype(jnp.float32) * (xf * inv).astype(x.dtype)


def transformer_block_ref(x, cos, sin, p, *, n_heads, n_kv_heads, eps, use_cache=False):
    bs, S, D = x.shape
    hd = D // n_heads
    n_rep = n_heads // n_kv_heads
    h_in = _rmsnorm_ref(x, p["attn_norm"], eps)
    xq = (h_in @ p["wq"]).reshape(bs, S, n_heads, hd)
    xk = (h_in @ p["wk"]).reshape(bs, S, n_kv_heads, hd)
    xv = (h_in @ p["wv"]).reshape(bs, S, n_kv_heads, hd)
    xq, xv = apply_rotary_emb(xq, xk, cos, sin)        # same quirk
    past_kv = (xk, xv) if use_cache else None
    q = jnp.transpose(xq, (0, 2, 1, 3))
    k = jnp.transpose(jnp.repeat(xk, n_rep, axis=2), (0, 2, 1, 3))
    v = jnp.transpose(jnp.repeat(xv, n_rep, axis=2), (0, 2, 1, 3))
    scores = jnp.einsum("bhqd,bhkd->bhqk", q, k) / math.sqrt(hd)
    mask = jnp.tril(jnp.ones((S, S), dtype=bool))
    scores = jnp.where(mask, scores, -jnp.inf)
    attn = jax.nn.softmax(scores, axis=-1)
    o = jnp.einsum("bhqk,bhkd->bhqd", attn, v)
    o = jnp.transpose(o, (0, 2, 1, 3)).reshape(bs, S, D)
    h = x + o @ p["wo"]
    hn = _rmsnorm_ref(h, p["ffn_norm"], eps)
    g = (hn @ p["w1"]) * (hn @ p["w3"])
    out = h + (g * jax.nn.sigmoid(g)) @ p["w2"]
    return out, past_kv


# --------------------------------------------------------------------------- #
if __name__ == "__main__":
    batch, seq, dim = 2, 8, 64
    n_heads, n_kv_heads = 4, 2
    head_dim = dim // n_heads
    eps = 1e-5
    rope_theta = 1_000_000.0
    multiple_of = 64
    hidden_dim = multiple_of * ((int(2 * (4 * dim) / 3) + multiple_of - 1) // multiple_of)

    keys = jax.random.split(jax.random.PRNGKey(0), 12)

    def w_init(k, shape, fan_in):
        return (fan_in ** -0.5) * jax.random.normal(k, shape, dtype=jnp.float32)

    # nn.Linear weights are stored here as (in_features, out_features): forward = x @ W.
    params = {
        "attn_norm": 1.0 + 0.1 * jax.random.normal(keys[0], (dim,), dtype=jnp.float32),
        "ffn_norm": 1.0 + 0.1 * jax.random.normal(keys[1], (dim,), dtype=jnp.float32),
        "wq": w_init(keys[2], (dim, n_heads * head_dim), dim),
        "wk": w_init(keys[3], (dim, n_kv_heads * head_dim), dim),
        "wv": w_init(keys[4], (dim, n_kv_heads * head_dim), dim),
        "wo": w_init(keys[5], (n_heads * head_dim, dim), dim),
        "w1": w_init(keys[6], (dim, hidden_dim), dim),
        "w2": w_init(keys[7], (hidden_dim, dim), hidden_dim),
        "w3": w_init(keys[8], (dim, hidden_dim), dim),
    }
    x = jax.random.normal(keys[9], (batch, seq, dim), dtype=jnp.float32)
    cos, sin = precompute_pos_cis(seq, head_dim, rope_theta)

    out, past_kv = transformer_block(x, cos, sin, params, n_heads=n_heads,
                                     n_kv_heads=n_kv_heads, eps=eps, use_cache=True)
    out = jax.block_until_ready(out)

    ref_out, ref_kv = transformer_block_ref(x, cos, sin, params, n_heads=n_heads,
                                            n_kv_heads=n_kv_heads, eps=eps, use_cache=True)

    assert out.shape == x.shape, (out.shape, x.shape)
    assert past_kv is not None
    assert past_kv[0].shape == (batch, seq, n_kv_heads, head_dim), past_kv[0].shape
    assert jnp.allclose(out, ref_out, atol=2e-2, rtol=2e-2), \
        float(jnp.max(jnp.abs(out - ref_out)))
    assert jnp.allclose(past_kv[0], ref_kv[0], atol=2e-2, rtol=2e-2)
    assert jnp.allclose(past_kv[1], ref_kv[1], atol=2e-2, rtol=2e-2)

    print("KERNEL_OK")
</pallas_src>

<mosaic_0001>
module attributes {stable_mosaic.version = 11 : i64} {
  func.func @_rmsnorm_kernel(%arg0: i32, %arg1: memref<8x64xf32, #tpu.memory_space<vmem>>, %arg2: memref<1x64xf32, #tpu.memory_space<vmem>>, %arg3: memref<8x64xf32, #tpu.memory_space<vmem>>) attributes {dimension_semantics = [#tpu.dimension_semantics<parallel>], iteration_bounds = array<i64: 2>, scalar_prefetch = 0 : i64, scratch_operands = 0 : i64, tpu.core_type = #tpu.core_type<tc>, window_params = [{transform_indices = @transform_0, window_bounds = array<i64: 8, 64>}, {pipeline_mode = #tpu.pipeline_mode<synchronous>, transform_indices = @transform_1, window_bounds = array<i64: 1, 64>}, {transform_indices = @transform_2, window_bounds = array<i64: 8, 64>}]} {
    %c0 = arith.constant 0 : index
    %c0_0 = arith.constant 0 : index
    %0 = vector.load %arg1[%c0, %c0_0] : memref<8x64xf32, #tpu.memory_space<vmem>>, vector<8x64xf32>
    %1 = arith.mulf %0, %0 : vector<8x64xf32>
    %cst = arith.constant dense<0.000000e+00> : vector<8xf32>
    %2 = vector.multi_reduction <add>, %1, %cst [1] : vector<8x64xf32> to vector<8xf32>
    %3 = vector.shape_cast %2 : vector<8xf32> to vector<8x1xf32>
    %cst_1 = arith.constant 6.400000e+01 : f32
    %4 = vector.broadcast %cst_1 : f32 to vector<8x1xf32>
    %5 = arith.divf %3, %4 : vector<8x1xf32>
    %cst_2 = arith.constant 9.99999974E-6 : f32
    %6 = vector.broadcast %cst_2 : f32 to vector<8x1xf32>
    %7 = arith.addf %5, %6 : vector<8x1xf32>
    %8 = math.rsqrt %7 : vector<8x1xf32>
    %9 = vector.broadcast %8 : vector<8x1xf32> to vector<8x64xf32>
    %10 = arith.mulf %0, %9 : vector<8x64xf32>
    %c0_3 = arith.constant 0 : index
    %c0_4 = arith.constant 0 : index
    %11 = vector.load %arg2[%c0_3, %c0_4] : memref<1x64xf32, #tpu.memory_space<vmem>>, vector<1x64xf32>
    %12 = vector.broadcast %11 : vector<1x64xf32> to vector<8x64xf32>
    %13 = arith.mulf %12, %10 : vector<8x64xf32>
    %c0_5 = arith.constant 0 : index
    %c0_6 = arith.constant 0 : index
    %14 = vector.load %arg3[%c0_5, %c0_6] : memref<8x64xf32, #tpu.memory_space<vmem>>, vector<8x64xf32>
    tpu.vector_store %arg3[%c0_5, %c0_6], %13 {strides = array<i32>} : memref<8x64xf32, #tpu.memory_space<vmem>>, vector<8x64xf32>,
    return
  }
  func.func @transform_0(%arg0: i32) -> (i32, i32) {
    %c0_i32 = arith.constant 0 : i32
    %c0_i32_0 = arith.constant 0 : i32
    return %arg0, %c0_i32 : i32, i32
  }
  func.func @transform_1(%arg0: i32) -> (i32, i32) {
    %c0_i32 = arith.constant 0 : i32
    %c0_i32_0 = arith.constant 0 : i32
    %c0_i32_1 = arith.constant 0 : i32
    return %c0_i32, %c0_i32_0 : i32, i32
  }
  func.func @transform_2(%arg0: i32) -> (i32, i32) {
    %c0_i32 = arith.constant 0 : i32
    %c0_i32_0 = arith.constant 0 : i32
    return %arg0, %c0_i32 : i32, i32
  }
}

</mosaic_0001>

<bundles_post_ra>
// kernel: tpu_custom_call.1
= control target key start
LH: loop header
LB: loop body
LE: loop exit
PB: predicated region body
PF: predicated region fallthrough
CT: control target
= control target key end

     0   :  { %7 = vsyncpa [#allocation3], 0  ;;  %s581_s0 = inlined_call_operand.hbm [shape: f32[16,64], index: 0, kind: input, shape index: {}]   ;;  %s582_s1 = inlined_call_operand.vmem [shape: f32[1,64], index: 1, kind: input, shape index: {}]   ;;  %s583_s2 = inlined_call_operand.hbm [shape: f32[16,64], index: 2, kind: output, shape index: {}]  }
   0x1   :  { %9 = vsyncpa [#allocation3 + $0x1], 0 }
   0x2   :  { %10 = vsyncpa [#allocation4], 0 }
   0x3   :  { %12 = vsyncpa [#allocation4 + $0x1], 0  ;;  %s435_s9 = smov 0   ;;  %s437_s10 = smov 0  }
   0x4   :  { %s439_s11 = smov 0   ;;  %s441_s12 = smov 0  }
   0x5 LB: > { %s456_s13 = sadd.s32 4294967295, %s416_s12   ;;  %s263_s14 = sadd.s32 4294967294, %s416_s12   ;;  %s416_s12 = sphi %s441_s12, %s600_s12   ;;  %s412_s11 = sphi %s439_s11, %s599_s11   ;;  %s408_s10 = sphi %s437_s10, %s598_s10   ;;  %s404_s9 = sphi %s435_s9, %s597_s9  }
   0x6   : > { %s460_s15 = sadd.s32 1, %s416_s12   ;;  %s25_s16 = sadd.s32 1, %s412_s11 }
   0x7   : > { %s22_s17 = ssub.s32 %s416_s12, %s460_s15  ;;  %p32_p0 = scmp.ne.s32.totalorder %s412_s11, %s408_s10 }
   0x8   : > { %p23_p1 = scmp.eq.s32.totalorder %s22_s17, 0  ;;  %p33_p2 = scmp.eq.s32.totalorder %s416_s12, 0 }
   0x9   : > { %p38_p3 = scmp.ne.s32.totalorder %s408_s10, %s404_s9  ;;  %p39_p4 = scmp.eq.s32.totalorder %s456_s13, 0 }
   0xa   : > { %s472_s18 = scalar_select %p23_p1, %s412_s11, %s25_s16  }
   0xb   : > { %p474_p5 = por %p33_p2, %p32_p0  ;;  %p478_p6 = por %p39_p4, %p38_p3 }
   0xc   : > { %p83_p7 = scmp.eq.s32.totalorder %s456_s13, 1  ;;  %p89_p8 = scmp.eq.s32.totalorder %s263_s14, 1 }
   0xd   : > { %s587_s20 = scalar_select %p478_p6, 1, 0 }
   0xe   : > { %p288_p10 = scmp.lt.s32.totalorder %s416_s12, 2  ;;  %p485_p11 = por %p83_p7, %p32_p0 }
   0xf   : > { %p489_p12 = por %p89_p8, %p38_p3  ;;  %s112_s23 = sand.u32 1, %s412_s11  }
  0x10   : > { %s588_s21 = scalar_select %p485_p11, 1, 0 }
  0x11   : > { %s589_s22 = scalar_select %p489_p12, 1, 0 }
  0x12   : > { %s267_s24 = sshll.u32 %s416_s12, 7  ;;  %s266_s25 = sshll.u32 %s112_s23, 3 }
  0x13   : > { %s498_s28 = scalar_lea.hbm %s581_s0, %s267_s24  ;;  %s116_s29 = scalar_lea.vmem [#allocation2], %s266_s25 }
  0x14   : > { %s123_s30 = sshll.u32 %s116_s29, 4  ;;  %p502_p13 = pnand %p288_p10, %p474_p5  ;;  %s506_s30 = int_to_ptr.vmem [resolvable:$true] %s123_s30 }
  0x15   : > { %s113_s4 = scalar_lea.sflag [#allocation3], %s112_s23  ;;  %s324_s5 = scalar_lea.hbm %s498_s28, 128 }
  0x16   : > { %p325_p2 = scmp.ne.s32.totalorder %s498_s28, %s324_s5  ;;  %p326_p3 = pneg %p502_p13 }
  0x17   : > { %s329_s8 = scalar_lea.hbm %s581_s0, 256  ;;  %p330_p5 = scmp.lt.s32.totalorder %s498_s28, %s581_s0 }
  0x18   : > { %p327_p4 = pnand %p326_p3, %p325_p2  ;;  %p331_p8 = scmp.lt.s32.totalorder %s329_s8, %s324_s5 }
  0x1a   : > { %p328_p7 = pneg %p327_p4  ;;  %p332_p10 = por %p331_p8, %p330_p5 }
  0x1c   : > { %p333_p9 = pnand %p332_p10, %p328_p7 }
  0x1e   : > { %336 = shalt.err (!%p333_p9)
}
  0x1f   : > { %s337_s17 = scalar_lea.vmem %s506_s30, 128  ;;  %s418_s19 = smov [#allocation2]  }
  0x20   : > { %p338_p0 = scmp.ne.s32.totalorder %s506_s30, %s337_s17  ;;  %s342_s23 = sshll.u32 %s418_s19, 4  ;;  %s343_s23 = int_to_ptr.vmem [resolvable:$false] %s342_s23 }
  0x21   : > { %s344_s24 = scalar_lea.vmem %s343_s23, 256  ;;  %p345_p4 = scmp.lt.s32.totalorder %s506_s30, %s343_s23 }
  0x22   : > { %p340_p1 = pnand %p338_p0, %p326_p3  ;;  %p346_p12 = scmp.lt.s32.totalorder %s344_s24, %s337_s17 }
  0x24   : > { %p341_p2 = pneg %p340_p1  ;;  %p347_p11 = por %p346_p12, %p345_p4 }
  0x26   : > { %p348_p6 = pnand %p347_p11, %p341_p2 }
  0x28   : > { %351 = shalt.err (!%p348_p6)
}
  0x29   : > { %283 = dma.hbm_to_vmem [thread:$0]  (!%p502_p13), %s498_s28, 128, %s506_s30, %s113_s4  }
  0x2a   : > { %p591_p9 = scmp.lt.s32.totalorder %s416_s12, 3  ;;  %p592_p7 = scmp.ge.s32.totalorder %s416_s12, 1 }
  0x2c   : > { %p129_p0 = pnand %p592_p7, %p591_p9 }
  0x2d   : > { %s533_s25 = sand.u32 (!%p129_p0), 1, %s408_s10   ;;  %p593_p6 = scmp.ne.s32.totalorder (!%p129_p0), %s587_s20, 0 }
  0x2e   : > { %132 = sbr.rel (%p129_p0) target bundleno = 229 (0xe5), region = 28  ;;  %s269_s26 = sshll.u32 (!%p129_p0), %s533_s25, 3 }
  0x2f   : > { %s135_s27 = scalar_lea.sflag (!%p129_p0), [#allocation3], %s533_s25  ;;  %s138_s29 = scalar_lea.vmem (!%p129_p0), [#allocation2], %s269_s26 }
  0x33   : > { %395 = dma.done.wait (%p593_p6), %s135_s27, 128  }
  0x34   : > { %397 = vsyncadd (%p593_p6), %s135_s27, 4294967168  ;;  %v159_v0 = vld [vmem:[%s138_s29] sm:$0xff]  ;;  %vm161_vm0 = vcmask 523264   ;;  %s273_s20 = sshll.u32 %s456_s13, 7  ;;  %s158_s3 = scalar_lea.vmem [#allocation5], %s269_s26 }
  0x35   : > { %v160_v1 = vmul.f32 %v159_v0, %v159_v0  ;;  %v271_v7 = vld [vmem:[%s582_s1] ss:$0 sm:$0xff]  ;;  %s193_s4 = sshll.u32 %s158_s3, 4  ;;  %s191_s7 = scalar_lea.hbm %s583_s2, %s273_s20  ;;  %s194_s4 = int_to_ptr.vmem [resolvable:$true] %s193_s4 }
  0x36   : > { %s180_s8 = scalar_lea.sflag [#allocation4], %s533_s25  ;;  %s352_s14 = scalar_lea.vmem %s194_s4, 128 }
  0x37   : > { %v162_v2 = vsel %vm161_vm0, %v160_v1, 0.0  ;;  %p353_p11 = scmp.ne.s32.totalorder %s194_s4, %s352_s14  ;;  %p594_p12 = scmp.ne.s32.totalorder %s588_s21, 0 }
  0x38   : > { %163 = vadd.xlane.f32.xlu0 %v162_v2  ;;  %s419_s16 = smov [#allocation5]  }
  0x39   : > { %p354_p13 = pnand %p353_p11, %p594_p12  ;;  %s356_s17 = sshll.u32 %s419_s16, 4  ;;  %s357_s17 = int_to_ptr.vmem [resolvable:$false] %s356_s17 }
  0x3a   : > { %s358_s13 = scalar_lea.vmem %s357_s17, 256  ;;  %p359_p3 = scmp.lt.s32.totalorder %s194_s4, %s357_s17 }
  0x3b   : > { %p355_p1 = pneg %p354_p13  ;;  %p360_p5 = scmp.lt.s32.totalorder %s358_s13, %s352_s14 }
  0x3d   : > { %p361_p8 = por %p360_p5, %p359_p3 }
  0x3f   : > { %p362_p10 = pnand %p361_p8, %p355_p1 }
  0xc1   : > { %v164_v3 = vpop.xlane.xlu0 %163 }
  0xc2   : > { %v166_v4 = vmul.f32 0.015625, %v164_v3 }
  0xc4   : > { %v167_v5 = vadd.f32 1e-05, %v166_v4 }
  0xc6   : > { %322 = vrsqrt.f32 %v167_v5 }
  0xd3   : > { %v323_v6 = vpop.eup %322 }
  0xd4   : > { %v169_v8 = vmul.f32 %v323_v6, %v159_v0 }
  0xd6   : > { %v177_v9 = vmul.f32 %v271_v7, %v169_v8 }
  0xd8   : > { %178 = vst.msk [vmem:[%s158_s3] sm:$0xff] %vm161_vm0, %v177_v9 }
  0xd9   : > { %365 = shalt.err (!%p362_p10)
}
  0xda   : > { %s366_s19 = scalar_lea.hbm %s191_s7, 128  ;;  %s370_s25 = scalar_lea.hbm %s583_s2, 256 }
  0xdb   : > { %p367_p2 = scmp.ne.s32.totalorder %s191_s7, %s366_s19  ;;  %p371_p7 = scmp.lt.s32.totalorder %s191_s7, %s583_s2 }
  0xdc   : > { %p372_p0 = scmp.lt.s32.totalorder %s370_s25, %s366_s19 }
  0xdd   : > { %p368_p4 = pnand %p367_p2, %p594_p12 }
  0xde   : > { %p373_p6 = por %p372_p0, %p371_p7 }
  0xdf   : > { %p369_p9 = pneg %p368_p4 }
  0xe1   : > { %p374_p11 = pnand %p373_p6, %p369_p9 }
  0xe3   : > { %377 = shalt.err (!%p374_p11)
}
  0xe4   : > { %278 = dma.vmem_to_hbm [thread:$0]  (%p594_p12), %s194_s4, 128, %s191_s7, %s180_s8  }
  0xe5 PF: > { %s205_s29 = sand.u32 1, %s404_s9   ;;  %p595_p13 = scmp.ne.s32.totalorder %s589_s22, 0 }
  0xe6   : > { %p596_p1 = scmp.ge.s32.totalorder %s416_s12, 2  ;;  %s206_s28 = scalar_lea.sflag [#allocation4], %s205_s29 }
  0xe8   : > { %p285_p3 = pnand %p596_p1, %p595_p13 }
  0xea   : > { %p286_p5 = pneg %p285_p3 }
  0xec   : > { %399 = dma.done.wait (%p286_p5), %s206_s28, 128  }
  0xed   : > { %401 = vsyncadd (%p286_p5), %s206_s28, 4294967168  ;;  %p15_p8 = scmp.ge.s32.totalorder %s460_s15, 4   ;;  %s597_s9 = smov %s408_s10 }
  0xee   : > { %s598_s10 = smov %s412_s11  ;;  %s599_s11 = smov %s472_s18 }
  0xef   : > { %s600_s12 = smov %s460_s15  ;;  %17 = sbr.rel (!%p15_p8) target bundleno = 5 (0x5), region = 73 }
  0xf4   :  { %211 = vsyncpa [#allocation3], 1 }
  0xf5   :  { %213 = vsyncpa [#allocation3 + $0x1], 1 }
  0xf6   :  { %214 = vsyncpa [#allocation4], 1 }
  0xf7   :  { %216 = vsyncpa [#allocation4 + $0x1], 1 }

</bundles_post_ra>
